<compile_context>
chip_gen: v7x
topology: tpu7x:2x2x1
jax: 0.10.0
libtpu: 0.0.40
codegen_flags: <defaults>
</compile_context>

<pallas_src>
import functools

import jax
import jax.numpy as jnp
from jax import lax
from jax.experimental import pallas as pl
from jax.experimental.pallas import tpu as pltpu

LANE = 128
CHUNK_ROWS = 8  # (8, 128) sub-slab = 1 f32 vreg per feature slab


def _round_up(a, m):
    return ((a + m - 1) // m) * m


def _mlp_kernel(x_ref, w1_ref, b1_ref, w2_ref, b2_ref, o_ref,
                *, in_dim, hid_dim, out_dim, chunk_rows):
    # x_ref:  (in_dim,  rows, 128) VMEM block  (batch dense on sublanes+lanes)
    # o_ref:  (out_dim, rows, 128) VMEM block
    # w1_ref: (in_dim, hid) SMEM   b1_ref: (hid,) SMEM
    # w2_ref: (hid, out)    SMEM   b2_ref: (out,) SMEM
    rows = x_ref.shape[1]
    num_chunks = rows // chunk_rows

    # Hoist all scalar SMEM reads out of the sub-slab loop (once per grid step).
    w1_s = [[w1_ref[k, j] for j in range(hid_dim)] for k in range(in_dim)]
    w2_s = [[w2_ref[j, m] for m in range(out_dim)] for j in range(hid_dim)]
    # Bias broadcasts hoisted too (JAX does not CSE broadcast_in_dim in loops).
    b1_v = [jnp.full((chunk_rows, LANE), b1_ref[j], jnp.float32)
            for j in range(hid_dim)]
    b2_v = [jnp.full((chunk_rows, LANE), b2_ref[m], jnp.float32)
            for m in range(out_dim)]

    def body(c, carry):
        r0 = pl.multiple_of(c * chunk_rows, chunk_rows)
        # 4 input slabs, each (chunk_rows, 128) = one f32 vreg.
        xs = [x_ref[k, pl.ds(r0, chunk_rows), :] for k in range(in_dim)]
        # fc2 accumulators initialized with bias; fc2 fused into the hidden
        # loop so at most ~7 slabs (+ hoisted biases) are live at once.
        ys = [b2_v[m] for m in range(out_dim)]
        for j in range(hid_dim):
            acc = b1_v[j]
            for k in range(in_dim):                      # VPU FMAs
                acc = acc + w1_s[k][j] * xs[k]
            h = jnp.tanh(acc)                            # EUP
            for m in range(out_dim):                     # fused fc2
                ys[m] = ys[m] + w2_s[j][m] * h
        for m in range(out_dim):                         # direct per-row store
            o_ref[m, pl.ds(r0, chunk_rows), :] = ys[m].astype(o_ref.dtype)
        return carry

    lax.fori_loop(0, num_chunks, body, 0, unroll=True)


def fully_connected_forward(x, w1, b1, w2, b2, *, block_b=8192):
    """y = tanh(x @ w1 + b1) @ w2 + b2.

    x: (B, in_dim); w1: (in_dim, hid); b1: (hid,); w2: (hid, out); b2: (out,).
    Weights stored pre-transposed as (in_features, out_features).
    """
    B, in_dim = x.shape
    hid_dim = w1.shape[1]
    out_dim = w2.shape[1]

    granule = CHUNK_ROWS * LANE                      # 1024: full (8,128) density
    b_pad = _round_up(B, granule)

    # Batch tile: multiple of 1024, capped at block_b and at the padded batch.
    tb = max(granule, min((max(block_b, granule) // granule) * granule, b_pad))
    # v7x has 2 TensorCores: keep at least 2 grid blocks when the batch allows.
    if b_pad // tb < 2 and b_pad >= 2 * granule:
        tb = _round_up(pl.cdiv(b_pad, 2), granule)
    n_blocks = pl.cdiv(b_pad, tb)
    b_full = n_blocks * tb
    rows = tb // LANE

    # Feature-major, lane/sublane-dense input layout: (in_dim, b_full//128, 128).
    # TODO(synk): accept x already in feature-major (in_dim, B) layout upstream
    # to eliminate this transpose HBM pass (review item 4); with row-major
    # (B, in_dim) input it cannot be removed without an in-kernel lane shuffle.
    xt = jnp.transpose(x)                                         # (in_dim, B)
    if b_full != B:
        xt = jnp.pad(xt, ((0, 0), (0, b_full - B)))
    xt = xt.reshape(in_dim, b_full // LANE, LANE)

    smem = pl.BlockSpec(memory_space=pltpu.MemorySpace.SMEM)
    kernel = functools.partial(_mlp_kernel, in_dim=in_dim, hid_dim=hid_dim,
                               out_dim=out_dim, chunk_rows=CHUNK_ROWS)

    yt = pl.pallas_call(
        kernel,
        out_shape=jax.ShapeDtypeStruct((out_dim, b_full // LANE, LANE),
                                       jnp.float32),
        grid_spec=pl.GridSpec(
            grid=(n_blocks,),
            in_specs=[
                pl.BlockSpec((in_dim, rows, LANE), lambda i: (0, i, 0)),
                smem, smem, smem, smem,            # weights/biases resident in SMEM
            ],
            out_specs=pl.BlockSpec((out_dim, rows, LANE), lambda i: (0, i, 0)),
        ),
        compiler_params=pltpu.CompilerParams(
            dimension_semantics=("parallel",),      # megacore sharding on v7x
        ),
    )(xt, w1, b1, w2, b2)

    # TODO(synk): emit the two output rows lane-interleaved in-kernel so this
    # transpose becomes a free reshape (review item 10, lower priority).
    return jnp.transpose(yt.reshape(out_dim, b_full)[:, :B])       # (B, out_dim)


def init_params(key, input_dim=4, hidden_dim=10, output_dim=2):
    """Matches torch.nn.Linear default init U(-1/sqrt(fan_in), 1/sqrt(fan_in))."""
    k1, k2, k3, k4 = jax.random.split(key, 4)
    bound1 = 1.0 / jnp.sqrt(jnp.float32(input_dim))
    bound2 = 1.0 / jnp.sqrt(jnp.float32(hidden_dim))
    # Stored as (in, out) = transpose of PyTorch's (out, in) weight layout.
    w1 = jax.random.uniform(k1, (input_dim, hidden_dim), jnp.float32, -bound1, bound1)
    b1 = jax.random.uniform(k2, (hidden_dim,), jnp.float32, -bound1, bound1)
    w2 = jax.random.uniform(k3, (hidden_dim, output_dim), jnp.float32, -bound2, bound2)
    b2 = jax.random.uniform(k4, (output_dim,), jnp.float32, -bound2, bound2)
    return w1, b1, w2, b2


if __name__ == "__main__":
    key = jax.random.PRNGKey(0)
    kx, kp, kx2 = jax.random.split(key, 3)

    input_dim, hidden_dim, output_dim = 4, 10, 2
    w1, b1, w2, b2 = init_params(kp, input_dim, hidden_dim, output_dim)

    # Small batch (single tile, heavy tail padding path).
    x = jax.random.normal(kx, (8, input_dim), jnp.float32)
    y = jax.block_until_ready(fully_connected_forward(x, w1, b1, w2, b2))
    ref = jnp.tanh(x @ w1 + b1) @ w2 + b2
    assert y.shape == (8, output_dim)
    assert jnp.allclose(y, ref, atol=1e-5, rtol=1e-5)

    # Multi-block batch (exercises the batch grid, padding, and sub-slab loop).
    x2 = jax.random.normal(kx2, (2050, input_dim), jnp.float32)
    y2 = jax.block_until_ready(
        fully_connected_forward(x2, w1, b1, w2, b2, block_b=1024))
    ref2 = jnp.tanh(x2 @ w1 + b1) @ w2 + b2
    assert y2.shape == (2050, output_dim)
    assert jnp.allclose(y2, ref2, atol=1e-5, rtol=1e-5)

    print("KERNEL_OK")
</pallas_src>

<mosaic_0001>
module attributes {stable_mosaic.version = 11 : i64} {
  func.func @_mlp_kernel(%arg0: i32, %arg1: memref<4x8x128xf32, #tpu.memory_space<vmem>>, %arg2: memref<4x10xf32, #tpu.memory_space<smem>>, %arg3: memref<10xf32, #tpu.memory_space<smem>>, %arg4: memref<10x2xf32, #tpu.memory_space<smem>>, %arg5: memref<2xf32, #tpu.memory_space<smem>>, %arg6: memref<2x8x128xf32, #tpu.memory_space<vmem>>) attributes {dimension_semantics = [#tpu.dimension_semantics<parallel>], iteration_bounds = array<i64: 1>, scalar_prefetch = 0 : i64, scratch_operands = 0 : i64, tpu.core_type = #tpu.core_type<tc>, window_params = [{transform_indices = @transform_0, window_bounds = array<i64: 4, 8, 128>}, {transform_indices = @transform_1, window_bounds = array<i64: 4, 10>}, {transform_indices = @transform_2, window_bounds = array<i64: 10>}, {transform_indices = @transform_3, window_bounds = array<i64: 10, 2>}, {transform_indices = @transform_4, window_bounds = array<i64: 2>}, {transform_indices = @transform_5, window_bounds = array<i64: 2, 8, 128>}]} {
    %c0 = arith.constant 0 : index
    %c0_0 = arith.constant 0 : index
    %0 = memref.load %arg2[%c0, %c0_0] : memref<4x10xf32, #tpu.memory_space<smem>>
    %c0_1 = arith.constant 0 : index
    %c1 = arith.constant 1 : index
    %1 = memref.load %arg2[%c0_1, %c1] : memref<4x10xf32, #tpu.memory_space<smem>>
    %c0_2 = arith.constant 0 : index
    %c2 = arith.constant 2 : index
    %2 = memref.load %arg2[%c0_2, %c2] : memref<4x10xf32, #tpu.memory_space<smem>>
    %c0_3 = arith.constant 0 : index
    %c3 = arith.constant 3 : index
    %3 = memref.load %arg2[%c0_3, %c3] : memref<4x10xf32, #tpu.memory_space<smem>>
    %c0_4 = arith.constant 0 : index
    %c4 = arith.constant 4 : index
    %4 = memref.load %arg2[%c0_4, %c4] : memref<4x10xf32, #tpu.memory_space<smem>>
    %c0_5 = arith.constant 0 : index
    %c5 = arith.constant 5 : index
    %5 = memref.load %arg2[%c0_5, %c5] : memref<4x10xf32, #tpu.memory_space<smem>>
    %c0_6 = arith.constant 0 : index
    %c6 = arith.constant 6 : index
    %6 = memref.load %arg2[%c0_6, %c6] : memref<4x10xf32, #tpu.memory_space<smem>>
    %c0_7 = arith.constant 0 : index
    %c7 = arith.constant 7 : index
    %7 = memref.load %arg2[%c0_7, %c7] : memref<4x10xf32, #tpu.memory_space<smem>>
    %c0_8 = arith.constant 0 : index
    %c8 = arith.constant 8 : index
    %8 = memref.load %arg2[%c0_8, %c8] : memref<4x10xf32, #tpu.memory_space<smem>>
    %c0_9 = arith.constant 0 : index
    %c9 = arith.constant 9 : index
    %9 = memref.load %arg2[%c0_9, %c9] : memref<4x10xf32, #tpu.memory_space<smem>>
    %c1_10 = arith.constant 1 : index
    %c0_11 = arith.constant 0 : index
    %10 = memref.load %arg2[%c1_10, %c0_11] : memref<4x10xf32, #tpu.memory_space<smem>>
    %c1_12 = arith.constant 1 : index
    %c1_13 = arith.constant 1 : index
    %11 = memref.load %arg2[%c1_12, %c1_13] : memref<4x10xf32, #tpu.memory_space<smem>>
    %c1_14 = arith.constant 1 : index
    %c2_15 = arith.constant 2 : index
    %12 = memref.load %arg2[%c1_14, %c2_15] : memref<4x10xf32, #tpu.memory_space<smem>>
    %c1_16 = arith.constant 1 : index
    %c3_17 = arith.constant 3 : index
    %13 = memref.load %arg2[%c1_16, %c3_17] : memref<4x10xf32, #tpu.memory_space<smem>>
    %c1_18 = arith.constant 1 : index
    %c4_19 = arith.constant 4 : index
    %14 = memref.load %arg2[%c1_18, %c4_19] : memref<4x10xf32, #tpu.memory_space<smem>>
    %c1_20 = arith.constant 1 : index
    %c5_21 = arith.constant 5 : index
    %15 = memref.load %arg2[%c1_20, %c5_21] : memref<4x10xf32, #tpu.memory_space<smem>>
    %c1_22 = arith.constant 1 : index
    %c6_23 = arith.constant 6 : index
    %16 = memref.load %arg2[%c1_22, %c6_23] : memref<4x10xf32, #tpu.memory_space<smem>>
    %c1_24 = arith.constant 1 : index
    %c7_25 = arith.constant 7 : index
    %17 = memref.load %arg2[%c1_24, %c7_25] : memref<4x10xf32, #tpu.memory_space<smem>>
    %c1_26 = arith.constant 1 : index
    %c8_27 = arith.constant 8 : index
    %18 = memref.load %arg2[%c1_26, %c8_27] : memref<4x10xf32, #tpu.memory_space<smem>>
    %c1_28 = arith.constant 1 : index
    %c9_29 = arith.constant 9 : index
    %19 = memref.load %arg2[%c1_28, %c9_29] : memref<4x10xf32, #tpu.memory_space<smem>>
    %c2_30 = arith.constant 2 : index
    %c0_31 = arith.constant 0 : index
    %20 = memref.load %arg2[%c2_30, %c0_31] : memref<4x10xf32, #tpu.memory_space<smem>>
    %c2_32 = arith.constant 2 : index
    %c1_33 = arith.constant 1 : index
    %21 = memref.load %arg2[%c2_32, %c1_33] : memref<4x10xf32, #tpu.memory_space<smem>>
    %c2_34 = arith.constant 2 : index
    %c2_35 = arith.constant 2 : index
    %22 = memref.load %arg2[%c2_34, %c2_35] : memref<4x10xf32, #tpu.memory_space<smem>>
    %c2_36 = arith.constant 2 : index
    %c3_37 = arith.constant 3 : index
    %23 = memref.load %arg2[%c2_36, %c3_37] : memref<4x10xf32, #tpu.memory_space<smem>>
    %c2_38 = arith.constant 2 : index
    %c4_39 = arith.constant 4 : index
    %24 = memref.load %arg2[%c2_38, %c4_39] : memref<4x10xf32, #tpu.memory_space<smem>>
    %c2_40 = arith.constant 2 : index
    %c5_41 = arith.constant 5 : index
    %25 = memref.load %arg2[%c2_40, %c5_41] : memref<4x10xf32, #tpu.memory_space<smem>>
    %c2_42 = arith.constant 2 : index
    %c6_43 = arith.constant 6 : index
    %26 = memref.load %arg2[%c2_42, %c6_43] : memref<4x10xf32, #tpu.memory_space<smem>>
    %c2_44 = arith.constant 2 : index
    %c7_45 = arith.constant 7 : index
    %27 = memref.load %arg2[%c2_44, %c7_45] : memref<4x10xf32, #tpu.memory_space<smem>>
    %c2_46 = arith.constant 2 : index
    %c8_47 = arith.constant 8 : index
    %28 = memref.load %arg2[%c2_46, %c8_47] : memref<4x10xf32, #tpu.memory_space<smem>>
    %c2_48 = arith.constant 2 : index
    %c9_49 = arith.constant 9 : index
    %29 = memref.load %arg2[%c2_48, %c9_49] : memref<4x10xf32, #tpu.memory_space<smem>>
    %c3_50 = arith.constant 3 : index
    %c0_51 = arith.constant 0 : index
    %30 = memref.load %arg2[%c3_50, %c0_51] : memref<4x10xf32, #tpu.memory_space<smem>>
    %c3_52 = arith.constant 3 : index
    %c1_53 = arith.constant 1 : index
    %31 = memref.load %arg2[%c3_52, %c1_53] : memref<4x10xf32, #tpu.memory_space<smem>>
    %c3_54 = arith.constant 3 : index
    %c2_55 = arith.constant 2 : index
    %32 = memref.load %arg2[%c3_54, %c2_55] : memref<4x10xf32, #tpu.memory_space<smem>>
    %c3_56 = arith.constant 3 : index
    %c3_57 = arith.constant 3 : index
    %33 = memref.load %arg2[%c3_56, %c3_57] : memref<4x10xf32, #tpu.memory_space<smem>>
    %c3_58 = arith.constant 3 : index
    %c4_59 = arith.constant 4 : index
    %34 = memref.load %arg2[%c3_58, %c4_59] : memref<4x10xf32, #tpu.memory_space<smem>>
    %c3_60 = arith.constant 3 : index
    %c5_61 = arith.constant 5 : index
    %35 = memref.load %arg2[%c3_60, %c5_61] : memref<4x10xf32, #tpu.memory_space<smem>>
    %c3_62 = arith.constant 3 : index
    %c6_63 = arith.constant 6 : index
    %36 = memref.load %arg2[%c3_62, %c6_63] : memref<4x10xf32, #tpu.memory_space<smem>>
    %c3_64 = arith.constant 3 : index
    %c7_65 = arith.constant 7 : index
    %37 = memref.load %arg2[%c3_64, %c7_65] : memref<4x10xf32, #tpu.memory_space<smem>>
    %c3_66 = arith.constant 3 : index
    %c8_67 = arith.constant 8 : index
    %38 = memref.load %arg2[%c3_66, %c8_67] : memref<4x10xf32, #tpu.memory_space<smem>>
    %c3_68 = arith.constant 3 : index
    %c9_69 = arith.constant 9 : index
    %39 = memref.load %arg2[%c3_68, %c9_69] : memref<4x10xf32, #tpu.memory_space<smem>>
    %c0_70 = arith.constant 0 : index
    %c0_71 = arith.constant 0 : index
    %40 = memref.load %arg4[%c0_70, %c0_71] : memref<10x2xf32, #tpu.memory_space<smem>>
    %c0_72 = arith.constant 0 : index
    %c1_73 = arith.constant 1 : index
    %41 = memref.load %arg4[%c0_72, %c1_73] : memref<10x2xf32, #tpu.memory_space<smem>>
    %c1_74 = arith.constant 1 : index
    %c0_75 = arith.constant 0 : index
    %42 = memref.load %arg4[%c1_74, %c0_75] : memref<10x2xf32, #tpu.memory_space<smem>>
    %c1_76 = arith.constant 1 : index
    %c1_77 = arith.constant 1 : index
    %43 = memref.load %arg4[%c1_76, %c1_77] : memref<10x2xf32, #tpu.memory_space<smem>>
    %c2_78 = arith.constant 2 : index
    %c0_79 = arith.constant 0 : index
    %44 = memref.load %arg4[%c2_78, %c0_79] : memref<10x2xf32, #tpu.memory_space<smem>>
    %c2_80 = arith.constant 2 : index
    %c1_81 = arith.constant 1 : index
    %45 = memref.load %arg4[%c2_80, %c1_81] : memref<10x2xf32, #tpu.memory_space<smem>>
    %c3_82 = arith.constant 3 : index
    %c0_83 = arith.constant 0 : index
    %46 = memref.load %arg4[%c3_82, %c0_83] : memref<10x2xf32, #tpu.memory_space<smem>>
    %c3_84 = arith.constant 3 : index
    %c1_85 = arith.constant 1 : index
    %47 = memref.load %arg4[%c3_84, %c1_85] : memref<10x2xf32, #tpu.memory_space<smem>>
    %c4_86 = arith.constant 4 : index
    %c0_87 = arith.constant 0 : index
    %48 = memref.load %arg4[%c4_86, %c0_87] : memref<10x2xf32, #tpu.memory_space<smem>>
    %c4_88 = arith.constant 4 : index
    %c1_89 = arith.constant 1 : index
    %49 = memref.load %arg4[%c4_88, %c1_89] : memref<10x2xf32, #tpu.memory_space<smem>>
    %c5_90 = arith.constant 5 : index
    %c0_91 = arith.constant 0 : index
    %50 = memref.load %arg4[%c5_90, %c0_91] : memref<10x2xf32, #tpu.memory_space<smem>>
    %c5_92 = arith.constant 5 : index
    %c1_93 = arith.constant 1 : index
    %51 = memref.load %arg4[%c5_92, %c1_93] : memref<10x2xf32, #tpu.memory_space<smem>>
    %c6_94 = arith.constant 6 : index
    %c0_95 = arith.constant 0 : index
    %52 = memref.load %arg4[%c6_94, %c0_95] : memref<10x2xf32, #tpu.memory_space<smem>>
    %c6_96 = arith.constant 6 : index
    %c1_97 = arith.constant 1 : index
    %53 = memref.load %arg4[%c6_96, %c1_97] : memref<10x2xf32, #tpu.memory_space<smem>>
    %c7_98 = arith.constant 7 : index
    %c0_99 = arith.constant 0 : index
    %54 = memref.load %arg4[%c7_98, %c0_99] : memref<10x2xf32, #tpu.memory_space<smem>>
    %c7_100 = arith.constant 7 : index
    %c1_101 = arith.constant 1 : index
    %55 = memref.load %arg4[%c7_100, %c1_101] : memref<10x2xf32, #tpu.memory_space<smem>>
    %c8_102 = arith.constant 8 : index
    %c0_103 = arith.constant 0 : index
    %56 = memref.load %arg4[%c8_102, %c0_103] : memref<10x2xf32, #tpu.memory_space<smem>>
    %c8_104 = arith.constant 8 : index
    %c1_105 = arith.constant 1 : index
    %57 = memref.load %arg4[%c8_104, %c1_105] : memref<10x2xf32, #tpu.memory_space<smem>>
    %c9_106 = arith.constant 9 : index
    %c0_107 = arith.constant 0 : index
    %58 = memref.load %arg4[%c9_106, %c0_107] : memref<10x2xf32, #tpu.memory_space<smem>>
    %c9_108 = arith.constant 9 : index
    %c1_109 = arith.constant 1 : index
    %59 = memref.load %arg4[%c9_108, %c1_109] : memref<10x2xf32, #tpu.memory_space<smem>>
    %c0_110 = arith.constant 0 : index
    %60 = memref.load %arg3[%c0_110] : memref<10xf32, #tpu.memory_space<smem>>
    %61 = vector.broadcast %60 : f32 to vector<8x128xf32>
    %c1_111 = arith.constant 1 : index
    %62 = memref.load %arg3[%c1_111] : memref<10xf32, #tpu.memory_space<smem>>
    %63 = vector.broadcast %62 : f32 to vector<8x128xf32>
    %c2_112 = arith.constant 2 : index
    %64 = memref.load %arg3[%c2_112] : memref<10xf32, #tpu.memory_space<smem>>
    %65 = vector.broadcast %64 : f32 to vector<8x128xf32>
    %c3_113 = arith.constant 3 : index
    %66 = memref.load %arg3[%c3_113] : memref<10xf32, #tpu.memory_space<smem>>
    %67 = vector.broadcast %66 : f32 to vector<8x128xf32>
    %c4_114 = arith.constant 4 : index
    %68 = memref.load %arg3[%c4_114] : memref<10xf32, #tpu.memory_space<smem>>
    %69 = vector.broadcast %68 : f32 to vector<8x128xf32>
    %c5_115 = arith.constant 5 : index
    %70 = memref.load %arg3[%c5_115] : memref<10xf32, #tpu.memory_space<smem>>
    %71 = vector.broadcast %70 : f32 to vector<8x128xf32>
    %c6_116 = arith.constant 6 : index
    %72 = memref.load %arg3[%c6_116] : memref<10xf32, #tpu.memory_space<smem>>
    %73 = vector.broadcast %72 : f32 to vector<8x128xf32>
    %c7_117 = arith.constant 7 : index
    %74 = memref.load %arg3[%c7_117] : memref<10xf32, #tpu.memory_space<smem>>
    %75 = vector.broadcast %74 : f32 to vector<8x128xf32>
    %c8_118 = arith.constant 8 : index
    %76 = memref.load %arg3[%c8_118] : memref<10xf32, #tpu.memory_space<smem>>
    %77 = vector.broadcast %76 : f32 to vector<8x128xf32>
    %c9_119 = arith.constant 9 : index
    %78 = memref.load %arg3[%c9_119] : memref<10xf32, #tpu.memory_space<smem>>
    %79 = vector.broadcast %78 : f32 to vector<8x128xf32>
    %c0_120 = arith.constant 0 : index
    %80 = memref.load %arg5[%c0_120] : memref<2xf32, #tpu.memory_space<smem>>
    %81 = vector.broadcast %80 : f32 to vector<8x128xf32>
    %c1_121 = arith.constant 1 : index
    %82 = memref.load %arg5[%c1_121] : memref<2xf32, #tpu.memory_space<smem>>
    %83 = vector.broadcast %82 : f32 to vector<8x128xf32>
    %c0_i32 = arith.constant 0 : i32
    %c8_i32 = arith.constant 8 : i32
    %84 = arith.muli %c0_i32, %c8_i32 : i32
    %85 = tpu.assume_multiple %84, 8 : i32
    %c0_122 = arith.constant 0 : index
    %86 = arith.index_cast %85 : i32 to index
    %c0_123 = arith.constant 0 : index
    %87 = vector.load %arg1[%c0_122, %86, %c0_123] : memref<4x8x128xf32, #tpu.memory_space<vmem>>, vector<1x8x128xf32>
    %88 = vector.shape_cast %87 : vector<1x8x128xf32> to vector<8x128xf32>
    %c1_124 = arith.constant 1 : index
    %89 = arith.index_cast %85 : i32 to index
    %c0_125 = arith.constant 0 : index
    %90 = vector.load %arg1[%c1_124, %89, %c0_125] : memref<4x8x128xf32, #tpu.memory_space<vmem>>, vector<1x8x128xf32>
    %91 = vector.shape_cast %90 : vector<1x8x128xf32> to vector<8x128xf32>
    %c2_126 = arith.constant 2 : index
    %92 = arith.index_cast %85 : i32 to index
    %c0_127 = arith.constant 0 : index
    %93 = vector.load %arg1[%c2_126, %92, %c0_127] : memref<4x8x128xf32, #tpu.memory_space<vmem>>, vector<1x8x128xf32>
    %94 = vector.shape_cast %93 : vector<1x8x128xf32> to vector<8x128xf32>
    %c3_128 = arith.constant 3 : index
    %95 = arith.index_cast %85 : i32 to index
    %c0_129 = arith.constant 0 : index
    %96 = vector.load %arg1[%c3_128, %95, %c0_129] : memref<4x8x128xf32, #tpu.memory_space<vmem>>, vector<1x8x128xf32>
    %97 = vector.shape_cast %96 : vector<1x8x128xf32> to vector<8x128xf32>
    %98 = vector.broadcast %0 : f32 to vector<8x128xf32>
    %99 = arith.mulf %98, %88 : vector<8x128xf32>
    %100 = arith.addf %61, %99 : vector<8x128xf32>
    %101 = vector.broadcast %10 : f32 to vector<8x128xf32>
    %102 = arith.mulf %101, %91 : vector<8x128xf32>
    %103 = arith.addf %100, %102 : vector<8x128xf32>
    %104 = vector.broadcast %20 : f32 to vector<8x128xf32>
    %105 = arith.mulf %104, %94 : vector<8x128xf32>
    %106 = arith.addf %103, %105 : vector<8x128xf32>
    %107 = vector.broadcast %30 : f32 to vector<8x128xf32>
    %108 = arith.mulf %107, %97 : vector<8x128xf32>
    %109 = arith.addf %106, %108 : vector<8x128xf32>
    %110 = math.tanh %109 : vector<8x128xf32>
    %111 = vector.broadcast %40 : f32 to vector<8x128xf32>
    %112 = arith.mulf %111, %110 : vector<8x128xf32>
    %113 = arith.addf %81, %112 : vector<8x128xf32>
    %114 = vector.broadcast %41 : f32 to vector<8x128xf32>
    %115 = arith.mulf %114, %110 : vector<8x128xf32>
    %116 = arith.addf %83, %115 : vector<8x128xf32>
    %117 = vector.broadcast %1 : f32 to vector<8x128xf32>
    %118 = arith.mulf %117, %88 : vector<8x128xf32>
    %119 = arith.addf %63, %118 : vector<8x128xf32>
    %120 = vector.broadcast %11 : f32 to vector<8x128xf32>
    %121 = arith.mulf %120, %91 : vector<8x128xf32>
    %122 = arith.addf %119, %121 : vector<8x128xf32>
    %123 = vector.broadcast %21 : f32 to vector<8x128xf32>
    %124 = arith.mulf %123, %94 : vector<8x128xf32>
    %125 = arith.addf %122, %124 : vector<8x128xf32>
    %126 = vector.broadcast %31 : f32 to vector<8x128xf32>
    %127 = arith.mulf %126, %97 : vector<8x128xf32>
    %128 = arith.addf %125, %127 : vector<8x128xf32>
    %129 = math.tanh %128 : vector<8x128xf32>
    %130 = vector.broadcast %42 : f32 to vector<8x128xf32>
    %131 = arith.mulf %130, %129 : vector<8x128xf32>
    %132 = arith.addf %113, %131 : vector<8x128xf32>
    %133 = vector.broadcast %43 : f32 to vector<8x128xf32>
    %134 = arith.mulf %133, %129 : vector<8x128xf32>
    %135 = arith.addf %116, %134 : vector<8x128xf32>
    %136 = vector.broadcast %2 : f32 to vector<8x128xf32>
    %137 = arith.mulf %136, %88 : vector<8x128xf32>
    %138 = arith.addf %65, %137 : vector<8x128xf32>
    %139 = vector.broadcast %12 : f32 to vector<8x128xf32>
    %140 = arith.mulf %139, %91 : vector<8x128xf32>
    %141 = arith.addf %138, %140 : vector<8x128xf32>
    %142 = vector.broadcast %22 : f32 to vector<8x128xf32>
    %143 = arith.mulf %142, %94 : vector<8x128xf32>
    %144 = arith.addf %141, %143 : vector<8x128xf32>
    %145 = vector.broadcast %32 : f32 to vector<8x128xf32>
    %146 = arith.mulf %145, %97 : vector<8x128xf32>
    %147 = arith.addf %144, %146 : vector<8x128xf32>
    %148 = math.tanh %147 : vector<8x128xf32>
    %149 = vector.broadcast %44 : f32 to vector<8x128xf32>
    %150 = arith.mulf %149, %148 : vector<8x128xf32>
    %151 = arith.addf %132, %150 : vector<8x128xf32>
    %152 = vector.broadcast %45 : f32 to vector<8x128xf32>
    %153 = arith.mulf %152, %148 : vector<8x128xf32>
    %154 = arith.addf %135, %153 : vector<8x128xf32>
    %155 = vector.broadcast %3 : f32 to vector<8x128xf32>
    %156 = arith.mulf %155, %88 : vector<8x128xf32>
    %157 = arith.addf %67, %156 : vector<8x128xf32>
    %158 = vector.broadcast %13 : f32 to vector<8x128xf32>
    %159 = arith.mulf %158, %91 : vector<8x128xf32>
    %160 = arith.addf %157, %159 : vector<8x128xf32>
    %161 = vector.broadcast %23 : f32 to vector<8x128xf32>
    %162 = arith.mulf %161, %94 : vector<8x128xf32>
    %163 = arith.addf %160, %162 : vector<8x128xf32>
    %164 = vector.broadcast %33 : f32 to vector<8x128xf32>
    %165 = arith.mulf %164, %97 : vector<8x128xf32>
    %166 = arith.addf %163, %165 : vector<8x128xf32>
    %167 = math.tanh %166 : vector<8x128xf32>
    %168 = vector.broadcast %46 : f32 to vector<8x128xf32>
    %169 = arith.mulf %168, %167 : vector<8x128xf32>
    %170 = arith.addf %151, %169 : vector<8x128xf32>
    %171 = vector.broadcast %47 : f32 to vector<8x128xf32>
    %172 = arith.mulf %171, %167 : vector<8x128xf32>
    %173 = arith.addf %154, %172 : vector<8x128xf32>
    %174 = vector.broadcast %4 : f32 to vector<8x128xf32>
    %175 = arith.mulf %174, %88 : vector<8x128xf32>
    %176 = arith.addf %69, %175 : vector<8x128xf32>
    %177 = vector.broadcast %14 : f32 to vector<8x128xf32>
    %178 = arith.mulf %177, %91 : vector<8x128xf32>
    %179 = arith.addf %176, %178 : vector<8x128xf32>
    %180 = vector.broadcast %24 : f32 to vector<8x128xf32>
    %181 = arith.mulf %180, %94 : vector<8x128xf32>
    %182 = arith.addf %179, %181 : vector<8x128xf32>
    %183 = vector.broadcast %34 : f32 to vector<8x128xf32>
    %184 = arith.mulf %183, %97 : vector<8x128xf32>
    %185 = arith.addf %182, %184 : vector<8x128xf32>
    %186 = math.tanh %185 : vector<8x128xf32>
    %187 = vector.broadcast %48 : f32 to vector<8x128xf32>
    %188 = arith.mulf %187, %186 : vector<8x128xf32>
    %189 = arith.addf %170, %188 : vector<8x128xf32>
    %190 = vector.broadcast %49 : f32 to vector<8x128xf32>
    %191 = arith.mulf %190, %186 : vector<8x128xf32>
    %192 = arith.addf %173, %191 : vector<8x128xf32>
    %193 = vector.broadcast %5 : f32 to vector<8x128xf32>
    %194 = arith.mulf %193, %88 : vector<8x128xf32>
    %195 = arith.addf %71, %194 : vector<8x128xf32>
    %196 = vector.broadcast %15 : f32 to vector<8x128xf32>
    %197 = arith.mulf %196, %91 : vector<8x128xf32>
    %198 = arith.addf %195, %197 : vector<8x128xf32>
    %199 = vector.broadcast %25 : f32 to vector<8x128xf32>
    %200 = arith.mulf %199, %94 : vector<8x128xf32>
    %201 = arith.addf %198, %200 : vector<8x128xf32>
    %202 = vector.broadcast %35 : f32 to vector<8x128xf32>
    %203 = arith.mulf %202, %97 : vector<8x128xf32>
    %204 = arith.addf %201, %203 : vector<8x128xf32>
    %205 = math.tanh %204 : vector<8x128xf32>
    %206 = vector.broadcast %50 : f32 to vector<8x128xf32>
    %207 = arith.mulf %206, %205 : vector<8x128xf32>
    %208 = arith.addf %189, %207 : vector<8x128xf32>
    %209 = vector.broadcast %51 : f32 to vector<8x128xf32>
    %210 = arith.mulf %209, %205 : vector<8x128xf32>
    %211 = arith.addf %192, %210 : vector<8x128xf32>
    %212 = vector.broadcast %6 : f32 to vector<8x128xf32>
    %213 = arith.mulf %212, %88 : vector<8x128xf32>
    %214 = arith.addf %73, %213 : vector<8x128xf32>
    %215 = vector.broadcast %16 : f32 to vector<8x128xf32>
    %216 = arith.mulf %215, %91 : vector<8x128xf32>
    %217 = arith.addf %214, %216 : vector<8x128xf32>
    %218 = vector.broadcast %26 : f32 to vector<8x128xf32>
    %219 = arith.mulf %218, %94 : vector<8x128xf32>
    %220 = arith.addf %217, %219 : vector<8x128xf32>
    %221 = vector.broadcast %36 : f32 to vector<8x128xf32>
    %222 = arith.mulf %221, %97 : vector<8x128xf32>
    %223 = arith.addf %220, %222 : vector<8x128xf32>
    %224 = math.tanh %223 : vector<8x128xf32>
    %225 = vector.broadcast %52 : f32 to vector<8x128xf32>
    %226 = arith.mulf %225, %224 : vector<8x128xf32>
    %227 = arith.addf %208, %226 : vector<8x128xf32>
    %228 = vector.broadcast %53 : f32 to vector<8x128xf32>
    %229 = arith.mulf %228, %224 : vector<8x128xf32>
    %230 = arith.addf %211, %229 : vector<8x128xf32>
    %231 = vector.broadcast %7 : f32 to vector<8x128xf32>
    %232 = arith.mulf %231, %88 : vector<8x128xf32>
    %233 = arith.addf %75, %232 : vector<8x128xf32>
    %234 = vector.broadcast %17 : f32 to vector<8x128xf32>
    %235 = arith.mulf %234, %91 : vector<8x128xf32>
    %236 = arith.addf %233, %235 : vector<8x128xf32>
    %237 = vector.broadcast %27 : f32 to vector<8x128xf32>
    %238 = arith.mulf %237, %94 : vector<8x128xf32>
    %239 = arith.addf %236, %238 : vector<8x128xf32>
    %240 = vector.broadcast %37 : f32 to vector<8x128xf32>
    %241 = arith.mulf %240, %97 : vector<8x128xf32>
    %242 = arith.addf %239, %241 : vector<8x128xf32>
    %243 = math.tanh %242 : vector<8x128xf32>
    %244 = vector.broadcast %54 : f32 to vector<8x128xf32>
    %245 = arith.mulf %244, %243 : vector<8x128xf32>
    %246 = arith.addf %227, %245 : vector<8x128xf32>
    %247 = vector.broadcast %55 : f32 to vector<8x128xf32>
    %248 = arith.mulf %247, %243 : vector<8x128xf32>
    %249 = arith.addf %230, %248 : vector<8x128xf32>
    %250 = vector.broadcast %8 : f32 to vector<8x128xf32>
    %251 = arith.mulf %250, %88 : vector<8x128xf32>
    %252 = arith.addf %77, %251 : vector<8x128xf32>
    %253 = vector.broadcast %18 : f32 to vector<8x128xf32>
    %254 = arith.mulf %253, %91 : vector<8x128xf32>
    %255 = arith.addf %252, %254 : vector<8x128xf32>
    %256 = vector.broadcast %28 : f32 to vector<8x128xf32>
    %257 = arith.mulf %256, %94 : vector<8x128xf32>
    %258 = arith.addf %255, %257 : vector<8x128xf32>
    %259 = vector.broadcast %38 : f32 to vector<8x128xf32>
    %260 = arith.mulf %259, %97 : vector<8x128xf32>
    %261 = arith.addf %258, %260 : vector<8x128xf32>
    %262 = math.tanh %261 : vector<8x128xf32>
    %263 = vector.broadcast %56 : f32 to vector<8x128xf32>
    %264 = arith.mulf %263, %262 : vector<8x128xf32>
    %265 = arith.addf %246, %264 : vector<8x128xf32>
    %266 = vector.broadcast %57 : f32 to vector<8x128xf32>
    %267 = arith.mulf %266, %262 : vector<8x128xf32>
    %268 = arith.addf %249, %267 : vector<8x128xf32>
    %269 = vector.broadcast %9 : f32 to vector<8x128xf32>
    %270 = arith.mulf %269, %88 : vector<8x128xf32>
    %271 = arith.addf %79, %270 : vector<8x128xf32>
    %272 = vector.broadcast %19 : f32 to vector<8x128xf32>
    %273 = arith.mulf %272, %91 : vector<8x128xf32>
    %274 = arith.addf %271, %273 : vector<8x128xf32>
    %275 = vector.broadcast %29 : f32 to vector<8x128xf32>
    %276 = arith.mulf %275, %94 : vector<8x128xf32>
    %277 = arith.addf %274, %276 : vector<8x128xf32>
    %278 = vector.broadcast %39 : f32 to vector<8x128xf32>
    %279 = arith.mulf %278, %97 : vector<8x128xf32>
    %280 = arith.addf %277, %279 : vector<8x128xf32>
    %281 = math.tanh %280 : vector<8x128xf32>
    %282 = vector.broadcast %58 : f32 to vector<8x128xf32>
    %283 = arith.mulf %282, %281 : vector<8x128xf32>
    %284 = arith.addf %265, %283 : vector<8x128xf32>
    %285 = vector.broadcast %59 : f32 to vector<8x128xf32>
    %286 = arith.mulf %285, %281 : vector<8x128xf32>
    %287 = arith.addf %268, %286 : vector<8x128xf32>
    %c0_130 = arith.constant 0 : index
    %288 = arith.index_cast %85 : i32 to index
    %c0_131 = arith.constant 0 : index
    %289 = vector.load %arg6[%c0_130, %288, %c0_131] : memref<2x8x128xf32, #tpu.memory_space<vmem>>, vector<1x8x128xf32>
    %290 = vector.shape_cast %289 : vector<1x8x128xf32> to vector<8x128xf32>
    %291 = vector.shape_cast %284 : vector<8x128xf32> to vector<1x8x128xf32>
    tpu.vector_store %arg6[%c0_130, %288, %c0_131], %291 {strides = array<i32>} : memref<2x8x128xf32, #tpu.memory_space<vmem>>, vector<1x8x128xf32>,
    %c1_132 = arith.constant 1 : index
    %292 = arith.index_cast %85 : i32 to index
    %c0_133 = arith.constant 0 : index
    %293 = vector.load %arg6[%c1_132, %292, %c0_133] : memref<2x8x128xf32, #tpu.memory_space<vmem>>, vector<1x8x128xf32>
    %294 = vector.shape_cast %293 : vector<1x8x128xf32> to vector<8x128xf32>
    %295 = vector.shape_cast %287 : vector<8x128xf32> to vector<1x8x128xf32>
    tpu.vector_store %arg6[%c1_132, %292, %c0_133], %295 {strides = array<i32>} : memref<2x8x128xf32, #tpu.memory_space<vmem>>, vector<1x8x128xf32>,
    %c1_i32 = arith.constant 1 : i32
    return
  }
  func.func @transform_0(%arg0: i32) -> (i32, i32, i32) {
    %c0_i32 = arith.constant 0 : i32
    %c0_i32_0 = arith.constant 0 : i32
    %c0_i32_1 = arith.constant 0 : i32
    return %c0_i32, %arg0, %c0_i32_0 : i32, i32, i32
  }
  func.func @transform_1(%arg0: i32) -> (i32, i32) {
    %c0_i32 = arith.constant 0 : i32
    %c0_i32_0 = arith.constant 0 : i32
    %c0_i32_1 = arith.constant 0 : i32
    return %c0_i32, %c0_i32_0 : i32, i32
  }
  func.func @transform_2(%arg0: i32) -> i32 {
    %c0_i32 = arith.constant 0 : i32
    %c0_i32_0 = arith.constant 0 : i32
    return %c0_i32 : i32
  }
  func.func @transform_3(%arg0: i32) -> (i32, i32) {
    %c0_i32 = arith.constant 0 : i32
    %c0_i32_0 = arith.constant 0 : i32
    %c0_i32_1 = arith.constant 0 : i32
    return %c0_i32, %c0_i32_0 : i32, i32
  }
  func.func @transform_4(%arg0: i32) -> i32 {
    %c0_i32 = arith.constant 0 : i32
    %c0_i32_0 = arith.constant 0 : i32
    return %c0_i32 : i32
  }
  func.func @transform_5(%arg0: i32) -> (i32, i32, i32) {
    %c0_i32 = arith.constant 0 : i32
    %c0_i32_0 = arith.constant 0 : i32
    %c0_i32_1 = arith.constant 0 : i32
    return %c0_i32, %arg0, %c0_i32_0 : i32, i32, i32
  }
}

</mosaic_0001>

<bundles_post_ra>
// kernel: tpu_custom_call.1
= control target key start
LH: loop header
LB: loop body
LE: loop exit
PB: predicated region body
PF: predicated region fallthrough
CT: control target
= control target key end

     0   :  { %10 = vsyncpa [#allocation3], 0  ;;  %s980_s0 = inlined_call_operand.hbm [shape: f32[4,8,128], index: 0, kind: input, shape index: {}]   ;;  %s981_s1 = inlined_call_operand.vmem [shape: f32[4,10], index: 1, kind: input, shape index: {}]   ;;  %s982_s2 = inlined_call_operand.vmem [shape: f32[10], index: 2, kind: input, shape index: {}]   ;;  %s983_s3 = inlined_call_operand.vmem [shape: f32[10,2], index: 3, kind: input, shape index: {}]   ;;  %s984_s4 = inlined_call_operand.vmem [shape: f32[2], index: 4, kind: input, shape index: {}]   ;;  %s985_s5 = inlined_call_operand.hbm [shape: f32[2,8,128], index: 5, kind: output, shape index: {}]  }
   0x1   :  { %11 = vsyncpa [#allocation5], 0 }
   0x2   :  { %12 = vsyncpa [#allocation8], 0 }
   0x3   :  { %13 = vsyncpa [#allocation11], 0  ;;  %s43_s20 = sshll.u32 %s982_s2, 4  ;;  %s44_s20 = int_to_ptr.vmem [resolvable:$true] %s43_s20 }
   0x4   :  { %14 = vsyncpa [#allocation4], 0  ;;  %s492_s21 = scalar_lea.vmem %s44_s20, 16  ;;  %p497_p1 = scmp.lt.s32.totalorder %s44_s20, %s44_s20 }
   0x5   :  { %p493_p0 = scmp.ne.s32.totalorder %s44_s20, %s492_s21  ;;  %p498_p2 = scmp.lt.s32.totalorder %s492_s21, %s492_s21 }
   0x7   :  { %p499_p3 = por %p498_p2, %p497_p1 }
   0x9   :  { %p500_p4 = pnand %p499_p3, %p493_p0 }
   0xb   :  { %503 = shalt.err (!%p500_p4)
}
   0xc   :  { %s594_s22 = smov [#allocation7]   ;;  %s595_s23 = smov [#allocation2]  }
   0xd   :  { %46 = dma.vmem_to_smem %s44_s20, 16, %s594_s22, [#allocation8]  }
   0xe   :  { %s20_s24 = sshll.u32 %s595_s23, 4  ;;  %s504_s27 = scalar_lea.hbm %s980_s0, 512  ;;  %s21_s24 = int_to_ptr.vmem [resolvable:$true] %s20_s24 }
   0xf   :  { %p505_p5 = scmp.ne.s32.totalorder %s980_s0, %s504_s27  ;;  %p508_p6 = scmp.lt.u32.totalorder %s504_s27, %s980_s0 }
  0x11   :  { %p510_p7 = pnand %p508_p6, %p505_p5 }
  0x13   :  { %513 = shalt.err (!%p510_p7)
}
  0x14   :  { %s514_s6 = scalar_lea.vmem %s21_s24, 512  ;;  %p519_p9 = scmp.lt.s32.totalorder %s21_s24, %s21_s24 }
  0x15   :  { %p515_p8 = scmp.ne.s32.totalorder %s21_s24, %s514_s6  ;;  %p520_p10 = scmp.lt.s32.totalorder %s514_s6, %s514_s6 }
  0x17   :  { %p521_p11 = por %p520_p10, %p519_p9 }
  0x19   :  { %p522_p12 = pnand %p521_p11, %p515_p8 }
  0x1b   :  { %525 = shalt.err (!%p522_p12)
}
  0x1c   :  { %s596_s7 = smov 128   ;;  %s597_s8 = smov 8  }
  0x1d   :  { %26 = dma.hbm_to_vmem [thread:$0]  %s980_s0, 512, %s21_s24, [#allocation3], %s596_s7, %s596_s7, %s597_s8  }
  0x1e   :  { %s33_s13 = sshll.u32 %s981_s1, 4  ;;  %s52_s16 = sshll.u32 %s983_s3, 4  ;;  %s34_s13 = int_to_ptr.vmem [resolvable:$true] %s33_s13  ;;  %s53_s16 = int_to_ptr.vmem [resolvable:$true] %s52_s16 }
  0x1f   :  { %s526_s17 = scalar_lea.vmem %s34_s13, 64  ;;  %p531_p0 = scmp.lt.s32.totalorder %s34_s13, %s34_s13 }
  0x20   :  { %p527_p13 = scmp.ne.s32.totalorder %s34_s13, %s526_s17  ;;  %p532_p1 = scmp.lt.s32.totalorder %s526_s17, %s526_s17 }
  0x22   :  { %p533_p2 = por %p532_p1, %p531_p0 }
  0x24   :  { %p534_p3 = pnand %p533_p2, %p527_p13 }
  0x26   :  { %537 = shalt.err (!%p534_p3)
}
  0x27   :  { %s598_s18 = smov [#allocation6]   ;;  %s538_s0 = scalar_lea.vmem %s53_s16, 256 }
  0x28   :  { %36 = dma.vmem_to_smem %s34_s13, 64, %s598_s18, [#allocation5]  }
  0x29   :  { %p539_p4 = scmp.ne.s32.totalorder %s53_s16, %s538_s0  ;;  %p543_p5 = scmp.lt.s32.totalorder %s53_s16, %s53_s16 }
  0x2a   :  { %p544_p6 = scmp.lt.s32.totalorder %s538_s0, %s538_s0 }
  0x2c   :  { %p545_p7 = por %p544_p6, %p543_p5 }
  0x2e   :  { %p546_p8 = pnand %p545_p7, %p539_p4 }
  0x30   :  { %549 = shalt.err (!%p546_p8)
}
  0x31   :  { %s599_s1 = smov [#allocation9]   ;;  %s65_s20 = sshll.u32 %s984_s4, 4  ;;  %s66_s20 = int_to_ptr.vmem [resolvable:$true] %s65_s20 }
  0x32   :  { %58 = dma.vmem_to_smem %s53_s16, 256, %s599_s1, [#allocation8], %s596_s7, %s596_s7, %s597_s8  }
  0x33   :  { %s550_s21 = scalar_lea.vmem %s66_s20, 16  ;;  %p555_p10 = scmp.lt.s32.totalorder %s66_s20, %s66_s20 }
  0x34   :  { %p551_p9 = scmp.ne.s32.totalorder %s66_s20, %s550_s21  ;;  %p556_p11 = scmp.lt.s32.totalorder %s550_s21, %s550_s21 }
  0x36   :  { %p557_p12 = por %p556_p11, %p555_p10 }
  0x38   :  { %p558_p13 = pnand %p557_p12, %p551_p9 }
  0x3a   :  { %561 = shalt.err (!%p558_p13)
}
  0x3b   :  { %s600_s22 = smov [#allocation10]  }
  0x3c   :  { %68 = dma.vmem_to_smem %s66_s20, 16, %s600_s22, [#allocation11]  }
  0x3d   :  { %584 = dma.done.wait [#allocation3], 512  }
  0x3e   :  { %585 = vsyncadd [#allocation3], 4294966784 }
  0x3f   :  { %586 = dma.done.wait [#allocation5], 64  }
  0x40   :  { %587 = vsyncadd [#allocation5], 4294967232 }
  0x41   :  { %588 = dma.done.wait [#allocation8], 272  }
  0x42   :  { %589 = vsyncadd [#allocation8], 4294967024 }
  0x43   :  { %590 = dma.done.wait [#allocation11], 16  }
  0x44   :  { %591 = vsyncadd [#allocation11], 4294967280 }
  0x45   :  { %84 = sfence }
  0x46   :  { %s85_s4 = sld [smem:[#allocation6]]  ;;  %s396_s23 = sld [smem:[#allocation6 + $0x1]]  ;;  %v169_v0 = vld [vmem:[#allocation2] sm:$0xff]  ;;  %v172_v11 = vld [vmem:[#allocation2 + $0x8] sm:$0xff]  ;;  %v175_v36 = vld [vmem:[#allocation2 + $0x10] sm:$0xff] }
  0x47   :  { %s662_s24 = sld [smem:[#allocation6 + $0x2]]  ;;  %s664_s25 = sld [smem:[#allocation6 + $0x3]]  ;;  %v816_v57 = vld [vmem:[#allocation2 + $0x18] sm:$0xff] }
  0x48   :  { %s666_s26 = sld [smem:[#allocation6 + $0x4]]  ;;  %s668_s27 = sld [smem:[#allocation6 + $0x5]] }
  0x49   :  { %s670_s28 = sld [smem:[#allocation6 + $0x6]]  ;;  %s672_s2 = sld [smem:[#allocation6 + $0x7]] }
  0x4a   :  { %s674_s29 = sld [smem:[#allocation6 + $0x8]]  ;;  %s676_s30 = sld [smem:[#allocation6 + $0x9]] }
  0x4b   :  { %s678_s6 = sld [smem:[#allocation6 + $0x80]]  ;;  %s680_s9 = sld [smem:[#allocation6 + $0x81]] }
  0x4c   :  { %s682_s10 = sld [smem:[#allocation6 + $0x82]]  ;;  %s684_s11 = sld [smem:[#allocation6 + $0x83]]  ;;  %v179_v1 = vstv %s85_s4  ;;  %v198_v2 = vstv %s396_s23 }
  0x4d   :  { %s686_s12 = sld [smem:[#allocation6 + $0x84]]  ;;  %s688_s13 = sld [smem:[#allocation6 + $0x85]]  ;;  %v706_v3 = vmul.f32 %v179_v1, %v169_v0  ;;  %v708_v4 = vmul.f32 %v198_v2, %v169_v0  ;;  %v217_v5 = vstv %s662_s24  ;;  %v236_v6 = vstv %s664_s25 }
  0x4e   :  { %s690_s14 = sld [smem:[#allocation6 + $0x86]]  ;;  %s692_s15 = sld [smem:[#allocation6 + $0x87]]  ;;  %v255_v7 = vstv %s666_s26  ;;  %v274_v8 = vstv %s668_s27  ;;  %v732_v16 = vmul.f32 %v217_v5, %v169_v0  ;;  %v735_v18 = vmul.f32 %v236_v6, %v169_v0 }
  0x4f   :  { %s694_s16 = sld [smem:[#allocation6 + $0x88]]  ;;  %s696_s17 = sld [smem:[#allocation6 + $0x89]]  ;;  %v293_v9 = vstv %s670_s28  ;;  %v312_v10 = vstv %s672_s2  ;;  %v742_v20 = vmul.f32 %v255_v7, %v169_v0  ;;  %v744_v21 = vmul.f32 %v274_v8, %v169_v0 }
  0x50   :  { %s698_s18 = sld [smem:[#allocation6 + $0x100]]  ;;  %s700_s0 = sld [smem:[#allocation6 + $0x101]]  ;;  %v331_v14 = vstv %s674_s29  ;;  %v350_v15 = vstv %s676_s30  ;;  %v746_v22 = vmul.f32 %v293_v9, %v169_v0  ;;  %v748_v23 = vmul.f32 %v312_v10, %v169_v0 }
  0x51   :  { %s702_s1 = sld [smem:[#allocation6 + $0x102]]  ;;  %s704_s3 = sld [smem:[#allocation6 + $0x103]]  ;;  %v182_v12 = vstv %s678_s6  ;;  %v201_v13 = vstv %s680_s9  ;;  %v758_v26 = vmul.f32 %v331_v14, %v169_v0  ;;  %v760_v27 = vmul.f32 %v350_v15, %v169_v0 }
  0x52   :  { %s712_s19 = sld [smem:[#allocation6 + $0x104]]  ;;  %s714_s20 = sld [smem:[#allocation6 + $0x105]]  ;;  %v220_v17 = vstv %s682_s10  ;;  %v239_v19 = vstv %s684_s11  ;;  %v754_v24 = vmul.f32 %v182_v12, %v172_v11  ;;  %v756_v25 = vmul.f32 %v201_v13, %v172_v11 }
  0x53   :  { %s720_s21 = sld [smem:[#allocation6 + $0x106]]  ;;  %s722_s22 = sld [smem:[#allocation6 + $0x107]]  ;;  %v766_v28 = vmul.f32 %v220_v17, %v172_v11  ;;  %v768_v29 = vmul.f32 %v239_v19, %v172_v11  ;;  %v258_v30 = vstv %s686_s12  ;;  %v277_v31 = vstv %s688_s13 }
  0x54   :  { %s728_s4 = sld [smem:[#allocation6 + $0x108]]  ;;  %s730_s23 = sld [smem:[#allocation6 + $0x109]]  ;;  %v296_v32 = vstv %s690_s14  ;;  %v315_v33 = vstv %s692_s15  ;;  %v784_v41 = vmul.f32 %v258_v30, %v172_v11  ;;  %v787_v43 = vmul.f32 %v277_v31, %v172_v11 }
  0x55   :  { %s738_s24 = sld [smem:[#allocation6 + $0x180]]  ;;  %s740_s25 = sld [smem:[#allocation6 + $0x181]]  ;;  %v334_v34 = vstv %s694_s16  ;;  %v353_v35 = vstv %s696_s17  ;;  %v790_v45 = vmul.f32 %v296_v32, %v172_v11  ;;  %v792_v46 = vmul.f32 %v315_v33, %v172_v11 }
  0x56   :  { %s750_s26 = sld [smem:[#allocation6 + $0x182]]  ;;  %s752_s27 = sld [smem:[#allocation6 + $0x183]]  ;;  %v185_v37 = vstv %s698_s18  ;;  %v204_v38 = vstv %s700_s0  ;;  %v794_v47 = vmul.f32 %v334_v34, %v172_v11  ;;  %v796_v48 = vmul.f32 %v353_v35, %v172_v11 }
  0x57   :  { %s762_s28 = sld [smem:[#allocation6 + $0x184]]  ;;  %s764_s2 = sld [smem:[#allocation6 + $0x185]]  ;;  %v223_v39 = vstv %s702_s1  ;;  %v242_v40 = vstv %s704_s3  ;;  %v186_v49 = vmul.f32 %v185_v37, %v175_v36  ;;  %v205_v50 = vmul.f32 %v204_v38, %v175_v36 }
  0x58   :  { %s772_s29 = sld [smem:[#allocation6 + $0x186]]  ;;  %s774_s30 = sld [smem:[#allocation6 + $0x187]]  ;;  %v261_v42 = vstv %s712_s19  ;;  %v280_v44 = vstv %s714_s20  ;;  %v224_v51 = vmul.f32 %v223_v39, %v175_v36  ;;  %v243_v52 = vmul.f32 %v242_v40, %v175_v36 }
  0x59   :  { %s798_s6 = sld [smem:[#allocation6 + $0x188]]  ;;  %s800_s9 = sld [smem:[#allocation6 + $0x189]]  ;;  %v806_v53 = vmul.f32 %v261_v42, %v175_v36  ;;  %v808_v54 = vmul.f32 %v280_v44, %v175_v36  ;;  %v299_v55 = vstv %s720_s21  ;;  %v318_v56 = vstv %s722_s22 }
  0x5a   :  { %s802_s10 = sld [smem:[#allocation7]]  ;;  %s804_s11 = sld [smem:[#allocation7 + $0x1]]  ;;  %v337_v60 = vstv %s728_s4  ;;  %v356_v61 = vstv %s730_s23  ;;  %v834_v2 = vmul.f32 %v299_v55, %v175_v36  ;;  %v837_v6 = vmul.f32 %v318_v56, %v175_v36 }
  0x5b   :  { %s812_s12 = sld [smem:[#allocation7 + $0x2]]  ;;  %s814_s13 = sld [smem:[#allocation7 + $0x3]]  ;;  %v188_v58 = vstv %s738_s24  ;;  %v207_v59 = vstv %s740_s25  ;;  %v846_v10 = vmul.f32 %v337_v60, %v175_v36  ;;  %v848_v11 = vmul.f32 %v356_v61, %v175_v36 }
  0x5c   :  { %s822_s14 = sld [smem:[#allocation7 + $0x4]]  ;;  %s824_s15 = sld [smem:[#allocation7 + $0x5]]  ;;  %v226_v62 = vstv %s750_s26  ;;  %v245_v63 = vstv %s752_s27  ;;  %v189_v8 = vmul.f32 %v188_v58, %v816_v57  ;;  %v208_v9 = vmul.f32 %v207_v59, %v816_v57 }
  0x5d   :  { %v264_v0 = vstv %s762_s28  ;;  %v283_v1 = vstv %s764_s2  ;;  %s830_s16 = sld [smem:[#allocation7 + $0x6]]  ;;  %s832_s17 = sld [smem:[#allocation7 + $0x7]]  ;;  %v227_v12 = vmul.f32 %v226_v62, %v816_v57  ;;  %v246_v13 = vmul.f32 %v245_v63, %v816_v57 }
  0x5e   :  { %v302_v5 = vstv %s772_s29  ;;  %v321_v7 = vstv %s774_s30  ;;  %s840_s18 = sld [smem:[#allocation7 + $0x8]]  ;;  %s842_s0 = sld [smem:[#allocation7 + $0x9]]  ;;  %v265_v14 = vmul.f32 %v264_v0, %v816_v57  ;;  %v284_v15 = vmul.f32 %v283_v1, %v816_v57 }
  0x5f   :  { %v303_v30 = vmul.f32 %v302_v5, %v816_v57  ;;  %v858_v31 = vmul.f32 %v321_v7, %v816_v57  ;;  %v340_v38 = vstv %s798_s6  ;;  %v359_v39 = vstv %s800_s9  ;;  %s882_s1 = sld [smem:[#allocation9]]  ;;  %s884_s3 = sld [smem:[#allocation9 + $0x1]] }
  0x60   :  { %v146_v17 = vstv %s802_s10  ;;  %v148_v19 = vstv %s804_s11  ;;  %s888_s19 = sld [smem:[#allocation9 + $0x80]]  ;;  %s890_s20 = sld [smem:[#allocation9 + $0x81]] }
  0x61   :  { %v150_v32 = vstv %s812_s12  ;;  %v152_v33 = vstv %s814_s13  ;;  %v181_v34 = vadd.f32 %v706_v3, %v146_v17  ;;  %v200_v35 = vadd.f32 %v708_v4, %v148_v19  ;;  %s895_s21 = sld [smem:[#allocation9 + $0x100]]  ;;  %s897_s22 = sld [smem:[#allocation9 + $0x101]] }
  0x62   :  { %v219_v36 = vadd.f32 %v732_v16, %v150_v32  ;;  %v238_v37 = vadd.f32 %v735_v18, %v152_v33  ;;  %v154_v40 = vstv %s822_s14  ;;  %v156_v42 = vstv %s824_s15  ;;  %s902_s4 = sld [smem:[#allocation10]]  ;;  %s904_s23 = sld [smem:[#allocation10 + $0x1]] }
  0x63   :  { %v184_v44 = vadd.f32 %v754_v24, %v181_v34  ;;  %v203_v55 = vadd.f32 %v756_v25, %v200_v35  ;;  %v158_v56 = vstv %s830_s16  ;;  %v160_v58 = vstv %s832_s17  ;;  %s909_s24 = sld [smem:[#allocation9 + $0x180]]  ;;  %s912_s25 = sld [smem:[#allocation9 + $0x181]] }
  0x64   :  { %v222_v59 = vadd.f32 %v766_v28, %v219_v36  ;;  %v241_v3 = vadd.f32 %v768_v29, %v238_v37  ;;  %v162_v60 = vstv %s840_s18  ;;  %v164_v4 = vstv %s842_s0  ;;  %s916_s26 = sld [smem:[#allocation9 + $0x200]]  ;;  %s918_s27 = sld [smem:[#allocation9 + $0x201]] }
  0x65   :  { %v187_v61 = vadd.f32 %v186_v49, %v184_v44  ;;  %v206_v16 = vadd.f32 %v205_v50, %v203_v55  ;;  %v257_v63 = vadd.f32 %v742_v20, %v154_v40  ;;  %v276_v0 = vadd.f32 %v744_v21, %v156_v42  ;;  %s923_s28 = sld [smem:[#allocation9 + $0x280]]  ;;  %s925_s2 = sld [smem:[#allocation9 + $0x281]] }
  0x66   :  { %v225_v62 = vadd.f32 %v224_v51, %v222_v59  ;;  %v244_v18 = vadd.f32 %v243_v52, %v241_v3  ;;  %v295_v25 = vadd.f32 %v746_v22, %v158_v56  ;;  %v314_v5 = vadd.f32 %v748_v23, %v160_v58  ;;  %s933_s29 = sld [smem:[#allocation9 + $0x300]]  ;;  %s935_s30 = sld [smem:[#allocation9 + $0x301]] }
  0x67   :  { %v190_v1 = vadd.f32 %v189_v8, %v187_v61  ;;  %v209_v24 = vadd.f32 %v208_v9, %v206_v16  ;;  %v260_v49 = vadd.f32 %v784_v41, %v257_v63  ;;  %v279_v50 = vadd.f32 %v787_v43, %v276_v0  ;;  %s940_s6 = sld [smem:[#allocation9 + $0x380]]  ;;  %s942_s9 = sld [smem:[#allocation9 + $0x381]] }
  0x68   :  { %v228_v28 = vadd.f32 %v227_v12, %v225_v62  ;;  %v247_v29 = vadd.f32 %v246_v13, %v244_v18  ;;  %v298_v20 = vadd.f32 %v790_v45, %v295_v25  ;;  %v317_v21 = vadd.f32 %v792_v46, %v314_v5  ;;  %s945_s10 = sld [smem:[#allocation9 + $0x400]]  ;;  %s947_s11 = sld [smem:[#allocation9 + $0x401]] }
  0x69   :  { %472 = vtanh.f32 %v190_v1  ;;  %v333_v22 = vadd.f32 %v758_v26, %v162_v60  ;;  %v263_v23 = vadd.f32 %v806_v53, %v260_v49  ;;  %v282_v41 = vadd.f32 %v808_v54, %v279_v50  ;;  %s951_s12 = sld [smem:[#allocation9 + $0x480]]  ;;  %s953_s13 = sld [smem:[#allocation9 + $0x481]] }
  0x6a   :  { %474 = vtanh.f32 %v209_v24  ;;  %v352_v43 = vadd.f32 %v760_v27, %v164_v4  ;;  %v301_v45 = vadd.f32 %v834_v2, %v298_v20  ;;  %v320_v26 = vadd.f32 %v837_v6, %v317_v21  ;;  %s601_s14 = smov [#allocation12]  }
  0x6b   :  { %476 = vtanh.f32 %v228_v28  ;;  %v336_v46 = vadd.f32 %v794_v47, %v333_v22  ;;  %v266_v51 = vadd.f32 %v265_v14, %v263_v23  ;;  %v285_v52 = vadd.f32 %v284_v15, %v282_v41  ;;  %s377_s15 = sshll.u32 %s601_s14, 4  ;;  %s378_s15 = int_to_ptr.vmem [resolvable:$true] %s377_s15 }
  0x6c   :  { %478 = vtanh.f32 %v247_v29  ;;  %v355_v27 = vadd.f32 %v796_v48, %v352_v43  ;;  %v304_v53 = vadd.f32 %v303_v30, %v301_v45  ;;  %v341_v2 = vmul.f32 %v340_v38, %v816_v57  ;;  %s562_s16 = scalar_lea.vmem %s378_s15, 256  ;;  %p567_p1 = scmp.lt.s32.totalorder %s378_s15, %s378_s15 }
  0x6d   :  { %v339_v54 = vadd.f32 %v846_v10, %v336_v46  ;;  %480 = vtanh.f32 %v266_v51  ;;  %v323_v47 = vadd.f32 %v858_v31, %v320_v26  ;;  %v360_v6 = vmul.f32 %v359_v39, %v816_v57  ;;  %p563_p0 = scmp.ne.s32.totalorder %s378_s15, %s562_s16  ;;  %p568_p2 = scmp.lt.s32.totalorder %s562_s16, %s562_s16 }
  0x6e   :  { %482 = vtanh.f32 %v285_v52  ;;  %v358_v48 = vadd.f32 %v848_v11, %v355_v27  ;;  %v192_v7 = vstv %s882_s1  ;;  %v195_v8 = vstv %s884_s3 }
  0x6f   :  { %484 = vtanh.f32 %v304_v53  ;;  %v342_v9 = vadd.f32 %v341_v2, %v339_v54  ;;  %v211_v10 = vstv %s888_s19  ;;  %v214_v12 = vstv %s890_s20  ;;  %p569_p3 = por %p568_p2, %p567_p1 }
  0x70   :  { %v230_v13 = vstv %s895_s21  ;;  %v233_v14 = vstv %s897_s22  ;;  %v166_v57 = vstv %s902_s4  ;;  %v168_v11 = vstv %s904_s23 }
  0x71   :  { %486 = vtanh.f32 %v323_v47  ;;  %v361_v17 = vadd.f32 %v360_v6, %v358_v48  ;;  %v249_v32 = vstv %s909_s24  ;;  %v252_v36 = vstv %s912_s25  ;;  %p570_p4 = pnand %p569_p3, %p563_p0 }
  0x72   :  { %488 = vtanh.f32 %v342_v9  ;;  %v268_v44 = vstv %s916_s26  ;;  %v271_v55 = vstv %s918_s27  ;;  %v287_v61 = vstv %s923_s28 }
  0x73   :  { %v473_v15 = vpop.eup %472  ;;  %490 = vtanh.f32 %v361_v17  ;;  %v290_v16 = vstv %s925_s2  ;;  %v306_v24 = vstv %s933_s29  ;;  %v309_v25 = vstv %s935_s30 }
  0x74   :  { %v475_v19 = vpop.eup %474  ;;  %v193_v30 = vmul.f32 %v473_v15, %v192_v7  ;;  %v196_v31 = vmul.f32 %v473_v15, %v195_v8  ;;  %v325_v20 = vstv %s940_s6  ;;  %v328_v21 = vstv %s942_s9 }
  0x75   :  { %v477_v33 = vpop.eup %476  ;;  %v212_v34 = vmul.f32 %v475_v19, %v211_v10  ;;  %v215_v35 = vmul.f32 %v475_v19, %v214_v12  ;;  %v344_v26 = vstv %s945_s10  ;;  %v347_v46 = vstv %s947_s11 }
  0x76   :  { %v479_v37 = vpop.eup %478  ;;  %v194_v38 = vadd.f32 %v193_v30, %v166_v57  ;;  %v197_v39 = vadd.f32 %v196_v31, %v168_v11  ;;  %v231_v40 = vmul.f32 %v477_v33, %v230_v13  ;;  %v234_v42 = vmul.f32 %v477_v33, %v233_v14 }
  0x77   :  { %v481_v56 = vpop.eup %480  ;;  %v250_v3 = vmul.f32 %v479_v37, %v249_v32  ;;  %v253_v60 = vmul.f32 %v479_v37, %v252_v36  ;;  %v363_v2 = vstv %s951_s12  ;;  %v366_v47 = vstv %s953_s13 }
  0x78   :  { %v213_v58 = vadd.f32 %v212_v34, %v194_v38  ;;  %v216_v59 = vadd.f32 %v215_v35, %v197_v39  ;;  %v483_v4 = vpop.eup %482  ;;  %v269_v63 = vmul.f32 %v481_v56, %v268_v44  ;;  %v272_v0 = vmul.f32 %v481_v56, %v271_v55 }
  0x79   :  { %v485_v1 = vpop.eup %484  ;;  %v288_v29 = vmul.f32 %v483_v4, %v287_v61  ;;  %v291_v49 = vmul.f32 %v483_v4, %v290_v16 }
  0x7a   :  { %v232_v62 = vadd.f32 %v231_v40, %v213_v58  ;;  %v235_v18 = vadd.f32 %v234_v42, %v216_v59  ;;  %v307_v41 = vmul.f32 %v485_v1, %v306_v24  ;;  %v310_v43 = vmul.f32 %v485_v1, %v309_v25 }
  0x7b   :  { %v487_v50 = vpop.eup %486 }
  0x7c   :  { %v251_v5 = vadd.f32 %v250_v3, %v232_v62  ;;  %v254_v28 = vadd.f32 %v253_v60, %v235_v18  ;;  %v489_v45 = vpop.eup %488  ;;  %v326_v27 = vmul.f32 %v487_v50, %v325_v20  ;;  %v329_v53 = vmul.f32 %v487_v50, %v328_v21 }
  0x7d   :  { %v491_v54 = vpop.eup %490  ;;  %v345_v7 = vmul.f32 %v489_v45, %v344_v26  ;;  %v348_v8 = vmul.f32 %v489_v45, %v347_v46 }
  0x7e   :  { %v270_v22 = vadd.f32 %v269_v63, %v251_v5  ;;  %v273_v23 = vadd.f32 %v272_v0, %v254_v28  ;;  %v364_v12 = vmul.f32 %v491_v54, %v363_v2  ;;  %v367_v13 = vmul.f32 %v491_v54, %v366_v47 }
  0x80   :  { %v289_v51 = vadd.f32 %v288_v29, %v270_v22  ;;  %v292_v52 = vadd.f32 %v291_v49, %v273_v23 }
  0x82   :  { %v308_v48 = vadd.f32 %v307_v41, %v289_v51  ;;  %v311_v6 = vadd.f32 %v310_v43, %v292_v52 }
  0x84   :  { %v327_v9 = vadd.f32 %v326_v27, %v308_v48  ;;  %v330_v10 = vadd.f32 %v329_v53, %v311_v6 }
  0x86   :  { %v346_v14 = vadd.f32 %v345_v7, %v327_v9  ;;  %v349_v15 = vadd.f32 %v348_v8, %v330_v10 }
  0x88   :  { %v365_v57 = vadd.f32 %v364_v12, %v346_v14  ;;  %v368_v11 = vadd.f32 %v367_v13, %v349_v15 }
  0x8a   :  { %369 = vst [vmem:[#allocation12] sm:$0xff] %v365_v57  ;;  %371 = vst [vmem:[#allocation12 + $0x8] sm:$0xff] %v368_v11 }
  0x8b   :  { %573 = shalt.err (!%p570_p4)
}
  0x8c   :  { %s574_s0 = scalar_lea.hbm %s985_s5, 256 }
  0x8d   :  { %p575_p5 = scmp.ne.s32.totalorder %s985_s5, %s574_s0  ;;  %p578_p6 = scmp.lt.u32.totalorder %s574_s0, %s985_s5 }
  0x8f   :  { %p580_p7 = pnand %p578_p6, %p575_p5 }
  0x91   :  { %583 = shalt.err (!%p580_p7)
}
  0x92   :  { %383 = dma.vmem_to_hbm [thread:$0]  %s378_s15, 256, %s985_s5, [#allocation4], %s596_s7, %s596_s7, %s597_s8  }
  0x93   :  { %592 = dma.done.wait [#allocation4], 256  }
  0x94   :  { %593 = vsyncadd [#allocation4], 4294967040 }
  0x95   :  { %387 = vsyncpa [#allocation3], 1 }
  0x96   :  { %388 = vsyncpa [#allocation4], 1 }
  0x97   :  { %389 = vsyncpa [#allocation5], 1 }
  0x98   :  { %390 = vsyncpa [#allocation8], 1 }
  0x99   :  { %391 = vsyncpa [#allocation11], 1 }

</bundles_post_ra>
